<compile_context>
chip_gen: v5e
topology: v5e:2x2
jax: 0.10.0
libtpu: 0.0.40
codegen_flags: <defaults>
</compile_context>

<pallas_src>
import math

import jax
import jax.numpy as jnp
from jax.experimental import pallas as pl
from jax.experimental.pallas import tpu as pltpu

# ----------------------- small synthetic model dims -----------------------
SEQ_LENGTH = 32          # transformer.seq_length (rotary table length)
S = 8                    # actual sequence length fed to the block
B = 2                    # batch
H = 32                   # hidden_size
NP = 4                   # num_attention_heads
HN = 8                   # kv_channels == head dim
NG = 2                   # multi_query_group_num (KV heads)
FFN = 64                 # ffn_hidden_size
ROT = HN // 2            # rotated dims per head (interleaved pairs)
RPG = NP // NG           # query heads per KV group
QDIM = NP * HN
KVDIM = NG * HN
QKV = QDIM + 2 * KVDIM
WFULL = QKV + QDIM + KVDIM       # fused [qkv | q@R | k@R] projection width
OUT_W = H + 2 * KVDIM            # packed output width [hidden | k | v]
EPS = 1e-5
NEG = -1e30              # stand-in for masked_fill(-inf); identical under causal softmax


# ------------------------------- kernel -----------------------------------
def glm_block_kernel(x_ref, bias_ref, cos_ref, sin_ref,
                     wfull_ref, bfull_ref, wdense_ref,
                     wh4h_ref, w4hh_ref, ln1_ref, ln2_ref,
                     out_ref):
    f32 = jnp.float32
    bf16 = jnp.bfloat16

    x = x_ref[...]                                             # [S, H] f32 (one batch)

    # ---- input RMSNorm (f32) ----
    var = jnp.mean(x * x, axis=-1, keepdims=True)
    xn = x * jax.lax.rsqrt(var + EPS) * ln1_ref[...]

    # ---- fused QKV + rotated-QK projection: one bf16 MXU matmul, f32 accum ----
    proj = jnp.dot(xn.astype(bf16), wfull_ref[...],
                   preferred_element_type=f32) + bfull_ref[...]
    q = proj[:, :QDIM]                                         # [S, QDIM]
    k = proj[:, QDIM:QDIM + KVDIM]                             # [S, KVDIM]
    v = proj[:, QDIM + KVDIM:QKV]                              # [S, KVDIM]
    q_rot = proj[:, QKV:QKV + QDIM]                            # (xn@W_q + b_q) @ Rq
    k_rot = proj[:, QKV + QDIM:]                               # (xn@W_k + b_k) @ Rk

    # ---- rotary: pure VPU mul/add (cos/sin broadcast across heads) ----
    cos = cos_ref[...]                                         # [S, HN]
    sin = sin_ref[...]
    q = q * jnp.tile(cos, (1, NP)) + q_rot * jnp.tile(sin, (1, NP))
    k = k * jnp.tile(cos, (1, NG)) + k_rot * jnp.tile(sin, (1, NG))

    # ---- grouped multi-query attention ----
    # heads sharing a KV group are stacked on the sublane axis; the KV group is
    # the batch dim of a single dot_general for scores and one for context.
    scale = 1.0 / math.sqrt(HN)
    q_g = q.reshape(S, NP, HN).transpose(1, 0, 2)              # [NP, S, HN]
    q_g = q_g.reshape(NG, RPG * S, HN)                         # rows ordered (r, s)
    k_g = k.reshape(S, NG, HN).transpose(1, 0, 2)              # [NG, S, HN]
    v_g = v.reshape(S, NG, HN).transpose(1, 0, 2)              # [NG, S, HN]

    scores = jnp.einsum('gqd,gkd->gqk',
                        q_g.astype(bf16), k_g.astype(bf16),
                        preferred_element_type=f32) * scale    # [NG, RPG*S, S]
    # additive mask bias (0 or NEG), replicated for the RPG stacked heads
    scores = scores + jnp.tile(bias_ref[...], (RPG, 1))[None]

    m = jnp.max(scores, axis=-1, keepdims=True)                # f32 softmax
    e = jnp.exp(scores - m)
    probs = e * pl.reciprocal(jnp.sum(e, axis=-1, keepdims=True), approx=True)

    ctx = jnp.einsum('gqk,gkd->gqd',
                     probs.astype(bf16), v_g.astype(bf16),
                     preferred_element_type=f32)               # [NG, RPG*S, HN]
    ctx = ctx.reshape(NP, S, HN).transpose(1, 0, 2).reshape(S, QDIM)

    # ---- attention output projection + residual ----
    attn_out = jnp.dot(ctx.astype(bf16), wdense_ref[...], preferred_element_type=f32)
    res1 = x + attn_out                                        # hidden_dropout = 0.0

    # ---- post-attention RMSNorm ----
    var2 = jnp.mean(res1 * res1, axis=-1, keepdims=True)
    xn2 = res1 * jax.lax.rsqrt(var2 + EPS) * ln2_ref[...]

    # ---- SwiGLU MLP (silu via exp + EUP reciprocal) ----
    mid = jnp.dot(xn2.astype(bf16), wh4h_ref[...], preferred_element_type=f32)
    g0 = mid[:, :FFN]
    g1 = mid[:, FFN:]
    act = g0 * pl.reciprocal(1.0 + jnp.exp(-g0), approx=True) * g1
    mlp_out = jnp.dot(act.astype(bf16), w4hh_ref[...], preferred_element_type=f32)

    # ---- single lane-dense packed store: [hidden | k_cache | v_cache] ----
    out_ref[...] = jnp.concatenate([res1 + mlp_out, k, v], axis=-1)


# --------------------------- wrapper / glue --------------------------------
def rotary_cache(table_len):
    # ChatGLM3 RotaryEmbedding(kv_channels // 2).forward_impl
    n_elem = HN // 2
    theta = 1.0 / (10000.0 ** (jnp.arange(0, n_elem, 2, dtype=jnp.float32) / n_elem))
    idx = jnp.arange(table_len, dtype=jnp.float32)
    idx_theta = jnp.outer(idx, theta)                          # [L, ROT//2]
    return jnp.stack([jnp.cos(idx_theta), jnp.sin(idx_theta)], axis=-1)  # [L, ROT//2, 2]


def _expand_cos_sin(rope_bs):  # rope_bs: [B, S, ROT//2, 2] -> per-head [B, S, HN]
    cos = jnp.repeat(rope_bs[..., 0], 2, axis=-1)              # interleave-repeat
    sin = jnp.repeat(rope_bs[..., 1], 2, axis=-1)
    cos_h = jnp.concatenate([cos, jnp.ones((B, S, HN - ROT), jnp.float32)], axis=-1)
    sin_h = jnp.concatenate([sin, jnp.zeros((B, S, HN - ROT), jnp.float32)], axis=-1)
    return cos_h, sin_h


def _pair_rot_matrix():
    Rm = jnp.zeros((HN, HN), jnp.float32)
    for i in range(ROT // 2):
        Rm = Rm.at[2 * i + 1, 2 * i].set(-1.0)                 # out[2i] += -x[2i+1]*sin
        Rm = Rm.at[2 * i, 2 * i + 1].set(1.0)                  # out[2i+1] +=  x[2i]*sin
    return Rm


def init_params(key):
    ks = jax.random.split(key, 7)
    sc = 0.05
    return dict(
        w_qkv=sc * jax.random.normal(ks[0], (H, QKV), jnp.float32),   # x @ w_qkv (== torch W.T)
        b_qkv=sc * jax.random.normal(ks[1], (1, QKV), jnp.float32),
        w_dense=sc * jax.random.normal(ks[2], (QDIM, H), jnp.float32),
        w_h4h=sc * jax.random.normal(ks[3], (H, 2 * FFN), jnp.float32),
        w_4hh=sc * jax.random.normal(ks[4], (FFN, H), jnp.float32),
        ln1=1.0 + 0.1 * jax.random.normal(ks[5], (1, H), jnp.float32),
        ln2=1.0 + 0.1 * jax.random.normal(ks[6], (1, H), jnp.float32),
    )


def chatglm_block_forward(params, hidden_states, position_ids, attention_mask):
    """hidden_states [S,B,H], position_ids [B,S], attention_mask bool [B,1,S,S]."""
    # rotary table lookup (Block.forward: rotary_pos_emb(SEQ_LENGTH)[position_ids])
    rope = rotary_cache(SEQ_LENGTH)[position_ids]              # [B, S, ROT//2, 2]
    cos_h, sin_h = _expand_cos_sin(rope)                       # [B, S, HN]
    cos_r = cos_h.reshape(B * S, HN)
    sin_r = sin_h.reshape(B * S, HN)

    # Fold the rotary pair-swap matmul into the fused QKV projection weights.
    Rm = _pair_rot_matrix()
    Rq = jnp.kron(jnp.eye(NP, dtype=jnp.float32), Rm)          # [QDIM, QDIM]
    Rk = jnp.kron(jnp.eye(NG, dtype=jnp.float32), Rm)          # [KVDIM, KVDIM]
    w_qkv, b_qkv = params['w_qkv'], params['b_qkv']
    w_full = jnp.concatenate(
        [w_qkv, w_qkv[:, :QDIM] @ Rq, w_qkv[:, QDIM:QDIM + KVDIM] @ Rk], axis=1)
    b_full = jnp.concatenate(
        [b_qkv, b_qkv[:, :QDIM] @ Rq, b_qkv[:, QDIM:QDIM + KVDIM] @ Rk], axis=1)

    x_bs = jnp.transpose(hidden_states, (1, 0, 2)).reshape(B * S, H)
    # additive attention bias: NEG where masked, 0 elsewhere
    mask_bias = (attention_mask.reshape(B, S, S).astype(jnp.float32) * NEG
                 ).reshape(B * S, S)

    bf16 = jnp.bfloat16
    row = lambda b: (b, 0)          # per-batch row block
    whole = lambda b: (0, 0)        # weights: resident, same block every step

    packed = pl.pallas_call(
        glm_block_kernel,
        out_shape=jax.ShapeDtypeStruct((B * S, OUT_W), jnp.float32),
        grid=(B,),
        in_specs=[
            pl.BlockSpec((S, H), row),           # x rows of batch b
            pl.BlockSpec((S, S), row),           # additive mask bias
            pl.BlockSpec((S, HN), row),          # cos (per head-dim)
            pl.BlockSpec((S, HN), row),          # sin
            pl.BlockSpec((H, WFULL), whole),     # fused qkv + rotated-qk weight (bf16)
            pl.BlockSpec((1, WFULL), whole),     # fused bias (f32)
            pl.BlockSpec((QDIM, H), whole),      # dense (bf16)
            pl.BlockSpec((H, 2 * FFN), whole),   # h_to_4h (bf16)
            pl.BlockSpec((FFN, H), whole),       # 4h_to_h (bf16)
            pl.BlockSpec((1, H), whole),         # ln1 weight
            pl.BlockSpec((1, H), whole),         # ln2 weight
        ],
        out_specs=pl.BlockSpec((S, OUT_W), row),
        compiler_params=pltpu.CompilerParams(
            dimension_semantics=("parallel",)),
    )(x_bs, mask_bias, cos_r, sin_r,
      w_full.astype(bf16), b_full,
      params['w_dense'].astype(bf16),
      params['w_h4h'].astype(bf16),
      params['w_4hh'].astype(bf16),
      params['ln1'], params['ln2'])

    hidden_out = packed[:, :H].reshape(B, S, H).transpose(1, 0, 2)              # [S, B, H]
    key = packed[:, H:H + KVDIM].reshape(B, S, NG, HN).transpose(1, 0, 2, 3)    # [S, B, NG, HN]
    value = packed[:, H + KVDIM:].reshape(B, S, NG, HN).transpose(1, 0, 2, 3)
    return hidden_out, (key, value)


# ----------------------- pure-JAX reference (PyTorch semantics) ------------
def ref_forward(params, hidden_states, position_ids, attention_mask):
    rope = rotary_cache(SEQ_LENGTH)[position_ids]              # [B,S,ROT//2,2]
    rope = jnp.transpose(rope, (1, 0, 2, 3))                   # [S,B,ROT//2,2]

    def rmsnorm(x, w):
        var = jnp.mean(x * x, axis=-1, keepdims=True)
        return x * jax.lax.rsqrt(var + EPS) * w.reshape(-1)

    def apply_rope(x, rc):                                     # x [S,B,n,HN]
        rot_dim = rc.shape[-2] * 2
        xr, xp = x[..., :rot_dim], x[..., rot_dim:]
        xs = xr.reshape(S, B, x.shape[2], rot_dim // 2, 2)
        rc = rc.reshape(S, B, 1, rot_dim // 2, 2)
        o0 = xs[..., 0] * rc[..., 0] - xs[..., 1] * rc[..., 1]
        o1 = xs[..., 1] * rc[..., 0] + xs[..., 0] * rc[..., 1]
        out = jnp.stack([o0, o1], axis=-1).reshape(S, B, x.shape[2], rot_dim)
        return jnp.concatenate([out, xp], axis=-1)

    x = hidden_states
    xn = rmsnorm(x, params['ln1'])
    qkv = jnp.einsum('sbh,hd->sbd', xn, params['w_qkv']) + params['b_qkv'].reshape(-1)
    q = qkv[..., :QDIM].reshape(S, B, NP, HN)
    k = qkv[..., QDIM:QDIM + KVDIM].reshape(S, B, NG, HN)
    v = qkv[..., QDIM + KVDIM:].reshape(S, B, NG, HN)
    q = apply_rope(q, rope)
    k = apply_rope(k, rope)
    past_kv = (k, v)
    kx = jnp.repeat(k, NP // NG, axis=2)
    vx = jnp.repeat(v, NP // NG, axis=2)
    scores = jnp.einsum('sbnh,tbnh->bnst', q, kx) / math.sqrt(HN)
    scores = jnp.where(attention_mask, NEG, scores)            # mask [B,1,S,S] broadcasts
    probs = jax.nn.softmax(scores, axis=-1)
    ctx = jnp.einsum('bnst,tbnh->sbnh', probs, vx).reshape(S, B, QDIM)
    attn_out = jnp.einsum('sbd,dh->sbh', ctx, params['w_dense'])
    res1 = x + attn_out
    xn2 = rmsnorm(res1, params['ln2'])
    mid = jnp.einsum('sbh,hd->sbd', xn2, params['w_h4h'])
    act = jax.nn.silu(mid[..., :FFN]) * mid[..., FFN:]
    mlp = jnp.einsum('sbf,fh->sbh', act, params['w_4hh'])
    return res1 + mlp, past_kv


# --------------------------------- main -------------------------------------
if __name__ == "__main__":
    root = jax.random.PRNGKey(0)
    pkey, hkey = jax.random.split(root)
    params = init_params(pkey)

    hidden_states = jax.random.normal(hkey, (S, B, H), jnp.float32)
    position_ids = jnp.broadcast_to(jnp.arange(S, dtype=jnp.int32), (B, S))
    causal = ~jnp.tril(jnp.ones((S, S), dtype=bool))           # True above diagonal = masked
    attention_mask = jnp.broadcast_to(causal[None, None], (B, 1, S, S))

    out, (k_c, v_c) = chatglm_block_forward(params, hidden_states, position_ids, attention_mask)
    jax.block_until_ready((out, k_c, v_c))

    ref_out, (rk, rv) = ref_forward(params, hidden_states, position_ids, attention_mask)
    assert jnp.allclose(out, ref_out, atol=2e-2, rtol=2e-2), float(jnp.max(jnp.abs(out - ref_out)))
    assert jnp.allclose(k_c, rk, atol=2e-2, rtol=2e-2)
    assert jnp.allclose(v_c, rv, atol=2e-2, rtol=2e-2)

    print("KERNEL_OK")
</pallas_src>

<mosaic_0001>
module attributes {stable_mosaic.version = 11 : i64} {
  func.func @glm_block_kernel(%arg0: i32, %arg1: memref<8x32xf32, #tpu.memory_space<vmem>>, %arg2: memref<8x8xf32, #tpu.memory_space<vmem>>, %arg3: memref<8x8xf32, #tpu.memory_space<vmem>>, %arg4: memref<8x8xf32, #tpu.memory_space<vmem>>, %arg5: memref<32x112xbf16, #tpu.memory_space<vmem>>, %arg6: memref<1x112xf32, #tpu.memory_space<vmem>>, %arg7: memref<32x32xbf16, #tpu.memory_space<vmem>>, %arg8: memref<32x128xbf16, #tpu.memory_space<vmem>>, %arg9: memref<64x32xbf16, #tpu.memory_space<vmem>>, %arg10: memref<1x32xf32, #tpu.memory_space<vmem>>, %arg11: memref<1x32xf32, #tpu.memory_space<vmem>>, %arg12: memref<8x64xf32, #tpu.memory_space<vmem>>) attributes {dimension_semantics = [#tpu.dimension_semantics<parallel>], iteration_bounds = array<i64: 2>, scalar_prefetch = 0 : i64, scratch_operands = 0 : i64, tpu.core_type = #tpu.core_type<tc>, window_params = [{transform_indices = @transform_0, window_bounds = array<i64: 8, 32>}, {transform_indices = @transform_1, window_bounds = array<i64: 8, 8>}, {transform_indices = @transform_2, window_bounds = array<i64: 8, 8>}, {transform_indices = @transform_3, window_bounds = array<i64: 8, 8>}, {pipeline_mode = #tpu.pipeline_mode<synchronous>, transform_indices = @transform_4, window_bounds = array<i64: 32, 112>}, {pipeline_mode = #tpu.pipeline_mode<synchronous>, transform_indices = @transform_5, window_bounds = array<i64: 1, 112>}, {pipeline_mode = #tpu.pipeline_mode<synchronous>, transform_indices = @transform_6, window_bounds = array<i64: 32, 32>}, {pipeline_mode = #tpu.pipeline_mode<synchronous>, transform_indices = @transform_7, window_bounds = array<i64: 32, 128>}, {pipeline_mode = #tpu.pipeline_mode<synchronous>, transform_indices = @transform_8, window_bounds = array<i64: 64, 32>}, {pipeline_mode = #tpu.pipeline_mode<synchronous>, transform_indices = @transform_9, window_bounds = array<i64: 1, 32>}, {pipeline_mode = #tpu.pipeline_mode<synchronous>, transform_indices = @transform_10, window_bounds = array<i64: 1, 32>}, {transform_indices = @transform_11, window_bounds = array<i64: 8, 64>}]} {
    %c0 = arith.constant 0 : index
    %c0_0 = arith.constant 0 : index
    %0 = vector.load %arg1[%c0, %c0_0] : memref<8x32xf32, #tpu.memory_space<vmem>>, vector<8x32xf32>
    %1 = arith.mulf %0, %0 : vector<8x32xf32>
    %cst = arith.constant dense<0.000000e+00> : vector<8xf32>
    %2 = vector.multi_reduction <add>, %1, %cst [1] : vector<8x32xf32> to vector<8xf32>
    %3 = vector.shape_cast %2 : vector<8xf32> to vector<8x1xf32>
    %cst_1 = arith.constant 3.200000e+01 : f32
    %4 = vector.broadcast %cst_1 : f32 to vector<8x1xf32>
    %5 = arith.divf %3, %4 : vector<8x1xf32>
    %cst_2 = arith.constant 9.99999974E-6 : f32
    %6 = vector.broadcast %cst_2 : f32 to vector<8x1xf32>
    %7 = arith.addf %5, %6 : vector<8x1xf32>
    %8 = math.rsqrt %7 : vector<8x1xf32>
    %9 = vector.broadcast %8 : vector<8x1xf32> to vector<8x32xf32>
    %10 = arith.mulf %0, %9 : vector<8x32xf32>
    %c0_3 = arith.constant 0 : index
    %c0_4 = arith.constant 0 : index
    %11 = vector.load %arg10[%c0_3, %c0_4] : memref<1x32xf32, #tpu.memory_space<vmem>>, vector<1x32xf32>
    %12 = vector.broadcast %11 : vector<1x32xf32> to vector<8x32xf32>
    %13 = arith.mulf %10, %12 : vector<8x32xf32>
    %14 = arith.truncf %13 : vector<8x32xf32> to vector<8x32xbf16>
    %c0_5 = arith.constant 0 : index
    %c0_6 = arith.constant 0 : index
    %15 = vector.load %arg5[%c0_5, %c0_6] : memref<32x112xbf16, #tpu.memory_space<vmem>>, vector<32x112xbf16>
    %cst_7 = arith.constant dense<0.000000e+00> : vector<8x112xf32>
    %16 = tpu.matmul %14, %15, %cst_7 {dimension_numbers = #tpu.dot_dimension_numbers<[1], [0], [0], [1], [0, 0, 1, 1], [], []>} : vector<8x32xbf16>, vector<32x112xbf16>, vector<8x112xf32> -> vector<8x112xf32>
    %c0_8 = arith.constant 0 : index
    %c0_9 = arith.constant 0 : index
    %17 = vector.load %arg6[%c0_8, %c0_9] : memref<1x112xf32, #tpu.memory_space<vmem>>, vector<1x112xf32>
    %18 = vector.broadcast %17 : vector<1x112xf32> to vector<8x112xf32>
    %19 = arith.addf %16, %18 : vector<8x112xf32>
    %20 = vector.extract_strided_slice %19 {offsets = [0, 0], sizes = [8, 32], strides = [1, 1]} : vector<8x112xf32> to vector<8x32xf32>
    %21 = vector.extract_strided_slice %19 {offsets = [0, 32], sizes = [8, 16], strides = [1, 1]} : vector<8x112xf32> to vector<8x16xf32>
    %22 = vector.extract_strided_slice %19 {offsets = [0, 48], sizes = [8, 16], strides = [1, 1]} : vector<8x112xf32> to vector<8x16xf32>
    %23 = vector.extract_strided_slice %19 {offsets = [0, 64], sizes = [8, 32], strides = [1, 1]} : vector<8x112xf32> to vector<8x32xf32>
    %24 = vector.extract_strided_slice %19 {offsets = [0, 96], sizes = [8, 16], strides = [1, 1]} : vector<8x112xf32> to vector<8x16xf32>
    %c0_10 = arith.constant 0 : index
    %c0_11 = arith.constant 0 : index
    %25 = vector.load %arg3[%c0_10, %c0_11] : memref<8x8xf32, #tpu.memory_space<vmem>>, vector<8x8xf32>
    %c0_12 = arith.constant 0 : index
    %c0_13 = arith.constant 0 : index
    %26 = vector.load %arg4[%c0_12, %c0_13] : memref<8x8xf32, #tpu.memory_space<vmem>>, vector<8x8xf32>
    %27 = tpu.concatenate %25, %25, %25, %25 in 1 : vector<8x8xf32>, vector<8x8xf32>, vector<8x8xf32>, vector<8x8xf32> -> vector<8x32xf32>
    %28 = arith.mulf %20, %27 : vector<8x32xf32>
    %29 = tpu.concatenate %26, %26, %26, %26 in 1 : vector<8x8xf32>, vector<8x8xf32>, vector<8x8xf32>, vector<8x8xf32> -> vector<8x32xf32>
    %30 = arith.mulf %23, %29 : vector<8x32xf32>
    %31 = arith.addf %28, %30 : vector<8x32xf32>
    %32 = tpu.concatenate %25, %25 in 1 : vector<8x8xf32>, vector<8x8xf32> -> vector<8x16xf32>
    %33 = arith.mulf %21, %32 : vector<8x16xf32>
    %34 = tpu.concatenate %26, %26 in 1 : vector<8x8xf32>, vector<8x8xf32> -> vector<8x16xf32>
    %35 = arith.mulf %24, %34 : vector<8x16xf32>
    %36 = arith.addf %33, %35 : vector<8x16xf32>
    %37 = vector.shape_cast %31 : vector<8x32xf32> to vector<8x4x8xf32>
    %38 = tpu.transpose %37, [1, 0, 2] : vector<8x4x8xf32> -> vector<4x8x8xf32>
    %39 = vector.shape_cast %38 : vector<4x8x8xf32> to vector<2x16x8xf32>
    %40 = vector.shape_cast %36 : vector<8x16xf32> to vector<8x2x8xf32>
    %41 = tpu.transpose %40, [1, 0, 2] : vector<8x2x8xf32> -> vector<2x8x8xf32>
    %42 = vector.shape_cast %22 : vector<8x16xf32> to vector<8x2x8xf32>
    %43 = tpu.transpose %42, [1, 0, 2] : vector<8x2x8xf32> -> vector<2x8x8xf32>
    %44 = arith.truncf %39 : vector<2x16x8xf32> to vector<2x16x8xbf16>
    %45 = arith.truncf %41 : vector<2x8x8xf32> to vector<2x8x8xbf16>
    "tpu.trace_start"() <{level = 10 : i32, message = "gqd,gkd->gqk"}> : () -> ()
    %cst_14 = arith.constant dense<0.000000e+00> : vector<2x16x8xf32>
    %46 = tpu.matmul %44, %45, %cst_14 {dimension_numbers = #tpu.dot_dimension_numbers<[2], [2], [1], [1], [0, 0, 0, 1, 1, 1], [0], [0]>} : vector<2x16x8xbf16>, vector<2x8x8xbf16>, vector<2x16x8xf32> -> vector<2x16x8xf32>
    "tpu.trace_stop"() : () -> ()
    %cst_15 = arith.constant 0.353553385 : f32
    %47 = vector.broadcast %cst_15 : f32 to vector<2x16x8xf32>
    %48 = arith.mulf %46, %47 : vector<2x16x8xf32>
    %c0_16 = arith.constant 0 : index
    %c0_17 = arith.constant 0 : index
    %49 = vector.load %arg2[%c0_16, %c0_17] : memref<8x8xf32, #tpu.memory_space<vmem>>, vector<8x8xf32>
    %50 = tpu.concatenate %49, %49 in 0 : vector<8x8xf32>, vector<8x8xf32> -> vector<16x8xf32>
    %51 = vector.shape_cast %50 : vector<16x8xf32> to vector<1x16x8xf32>
    %52 = vector.broadcast %51 : vector<1x16x8xf32> to vector<2x16x8xf32>
    %53 = arith.addf %48, %52 : vector<2x16x8xf32>
    %cst_18 = arith.constant dense<0xFF800000> : vector<2x16xf32>
    %54 = vector.multi_reduction <maximumf>, %53, %cst_18 [2] : vector<2x16x8xf32> to vector<2x16xf32>
    %55 = vector.shape_cast %54 : vector<2x16xf32> to vector<2x16x1xf32>
    %56 = vector.broadcast %55 : vector<2x16x1xf32> to vector<2x16x8xf32>
    %57 = arith.subf %53, %56 : vector<2x16x8xf32>
    %58 = math.exp %57 : vector<2x16x8xf32>
    %cst_19 = arith.constant dense<0.000000e+00> : vector<2x16xf32>
    %59 = vector.multi_reduction <add>, %58, %cst_19 [2] : vector<2x16x8xf32> to vector<2x16xf32>
    %60 = vector.shape_cast %59 : vector<2x16xf32> to vector<2x16x1xf32>
    %61 = tpu.reciprocal %60 {approx = true} : vector<2x16x1xf32> -> vector<2x16x1xf32>
    %62 = vector.broadcast %61 : vector<2x16x1xf32> to vector<2x16x8xf32>
    %63 = arith.mulf %58, %62 : vector<2x16x8xf32>
    %64 = arith.truncf %63 : vector<2x16x8xf32> to vector<2x16x8xbf16>
    %65 = arith.truncf %43 : vector<2x8x8xf32> to vector<2x8x8xbf16>
    "tpu.trace_start"() <{level = 10 : i32, message = "gqk,gkd->gqd"}> : () -> ()
    %cst_20 = arith.constant dense<0.000000e+00> : vector<2x16x8xf32>
    %66 = tpu.matmul %64, %65, %cst_20 {dimension_numbers = #tpu.dot_dimension_numbers<[2], [1], [1], [2], [0, 0, 0, 1, 1, 2], [0], [0]>} : vector<2x16x8xbf16>, vector<2x8x8xbf16>, vector<2x16x8xf32> -> vector<2x16x8xf32>
    "tpu.trace_stop"() : () -> ()
    %67 = vector.shape_cast %66 : vector<2x16x8xf32> to vector<4x8x8xf32>
    %68 = tpu.transpose %67, [1, 0, 2] : vector<4x8x8xf32> -> vector<8x4x8xf32>
    %69 = vector.shape_cast %68 : vector<8x4x8xf32> to vector<8x32xf32>
    %70 = arith.truncf %69 : vector<8x32xf32> to vector<8x32xbf16>
    %c0_21 = arith.constant 0 : index
    %c0_22 = arith.constant 0 : index
    %71 = vector.load %arg7[%c0_21, %c0_22] : memref<32x32xbf16, #tpu.memory_space<vmem>>, vector<32x32xbf16>
    %cst_23 = arith.constant dense<0.000000e+00> : vector<8x32xf32>
    %72 = tpu.matmul %70, %71, %cst_23 {dimension_numbers = #tpu.dot_dimension_numbers<[1], [0], [0], [1], [0, 0, 1, 1], [], []>} : vector<8x32xbf16>, vector<32x32xbf16>, vector<8x32xf32> -> vector<8x32xf32>
    %73 = arith.addf %0, %72 : vector<8x32xf32>
    %74 = arith.mulf %73, %73 : vector<8x32xf32>
    %cst_24 = arith.constant dense<0.000000e+00> : vector<8xf32>
    %75 = vector.multi_reduction <add>, %74, %cst_24 [1] : vector<8x32xf32> to vector<8xf32>
    %76 = vector.shape_cast %75 : vector<8xf32> to vector<8x1xf32>
    %cst_25 = arith.constant 3.200000e+01 : f32
    %77 = vector.broadcast %cst_25 : f32 to vector<8x1xf32>
    %78 = arith.divf %76, %77 : vector<8x1xf32>
    %cst_26 = arith.constant 9.99999974E-6 : f32
    %79 = vector.broadcast %cst_26 : f32 to vector<8x1xf32>
    %80 = arith.addf %78, %79 : vector<8x1xf32>
    %81 = math.rsqrt %80 : vector<8x1xf32>
    %82 = vector.broadcast %81 : vector<8x1xf32> to vector<8x32xf32>
    %83 = arith.mulf %73, %82 : vector<8x32xf32>
    %c0_27 = arith.constant 0 : index
    %c0_28 = arith.constant 0 : index
    %84 = vector.load %arg11[%c0_27, %c0_28] : memref<1x32xf32, #tpu.memory_space<vmem>>, vector<1x32xf32>
    %85 = vector.broadcast %84 : vector<1x32xf32> to vector<8x32xf32>
    %86 = arith.mulf %83, %85 : vector<8x32xf32>
    %87 = arith.truncf %86 : vector<8x32xf32> to vector<8x32xbf16>
    %c0_29 = arith.constant 0 : index
    %c0_30 = arith.constant 0 : index
    %88 = vector.load %arg8[%c0_29, %c0_30] : memref<32x128xbf16, #tpu.memory_space<vmem>>, vector<32x128xbf16>
    %cst_31 = arith.constant dense<0.000000e+00> : vector<8x128xf32>
    %89 = tpu.matmul %87, %88, %cst_31 {dimension_numbers = #tpu.dot_dimension_numbers<[1], [0], [0], [1], [0, 0, 1, 1], [], []>} : vector<8x32xbf16>, vector<32x128xbf16>, vector<8x128xf32> -> vector<8x128xf32>
    %90 = vector.extract_strided_slice %89 {offsets = [0, 0], sizes = [8, 64], strides = [1, 1]} : vector<8x128xf32> to vector<8x64xf32>
    %91 = vector.extract_strided_slice %89 {offsets = [0, 64], sizes = [8, 64], strides = [1, 1]} : vector<8x128xf32> to vector<8x64xf32>
    %cst_32 = arith.constant 0.000000e+00 : f32
    %92 = vector.broadcast %cst_32 : f32 to vector<8x64xf32>
    %93 = arith.subf %92, %90 : vector<8x64xf32>
    %94 = math.exp %93 : vector<8x64xf32>
    %cst_33 = arith.constant 1.000000e+00 : f32
    %95 = vector.broadcast %cst_33 : f32 to vector<8x64xf32>
    %96 = arith.addf %95, %94 : vector<8x64xf32>
    %97 = tpu.reciprocal %96 {approx = true} : vector<8x64xf32> -> vector<8x64xf32>
    %98 = arith.mulf %90, %97 : vector<8x64xf32>
    %99 = arith.mulf %98, %91 : vector<8x64xf32>
    %100 = arith.truncf %99 : vector<8x64xf32> to vector<8x64xbf16>
    %c0_34 = arith.constant 0 : index
    %c0_35 = arith.constant 0 : index
    %101 = vector.load %arg9[%c0_34, %c0_35] : memref<64x32xbf16, #tpu.memory_space<vmem>>, vector<64x32xbf16>
    %cst_36 = arith.constant dense<0.000000e+00> : vector<8x32xf32>
    %102 = tpu.matmul %100, %101, %cst_36 {dimension_numbers = #tpu.dot_dimension_numbers<[1], [0], [0], [1], [0, 0, 1, 1], [], []>} : vector<8x64xbf16>, vector<64x32xbf16>, vector<8x32xf32> -> vector<8x32xf32>
    %103 = arith.addf %73, %102 : vector<8x32xf32>
    %104 = tpu.concatenate %103, %36, %22 in 1 : vector<8x32xf32>, vector<8x16xf32>, vector<8x16xf32> -> vector<8x64xf32>
    %c0_37 = arith.constant 0 : index
    %c0_38 = arith.constant 0 : index
    %105 = vector.load %arg12[%c0_37, %c0_38] : memref<8x64xf32, #tpu.memory_space<vmem>>, vector<8x64xf32>
    tpu.vector_store %arg12[%c0_37, %c0_38], %104 {strides = array<i32>} : memref<8x64xf32, #tpu.memory_space<vmem>>, vector<8x64xf32>,
    return
  }
  func.func @transform_0(%arg0: i32) -> (i32, i32) {
    %c0_i32 = arith.constant 0 : i32
    %c0_i32_0 = arith.constant 0 : i32
    return %arg0, %c0_i32 : i32, i32
  }
  func.func @transform_1(%arg0: i32) -> (i32, i32) {
    %c0_i32 = arith.constant 0 : i32
    %c0_i32_0 = arith.constant 0 : i32
    return %arg0, %c0_i32 : i32, i32
  }
  func.func @transform_2(%arg0: i32) -> (i32, i32) {
    %c0_i32 = arith.constant 0 : i32
    %c0_i32_0 = arith.constant 0 : i32
    return %arg0, %c0_i32 : i32, i32
  }
  func.func @transform_3(%arg0: i32) -> (i32, i32) {
    %c0_i32 = arith.constant 0 : i32
    %c0_i32_0 = arith.constant 0 : i32
    return %arg0, %c0_i32 : i32, i32
  }
  func.func @transform_4(%arg0: i32) -> (i32, i32) {
    %c0_i32 = arith.constant 0 : i32
    %c0_i32_0 = arith.constant 0 : i32
    %c0_i32_1 = arith.constant 0 : i32
    return %c0_i32, %c0_i32_0 : i32, i32
  }
  func.func @transform_5(%arg0: i32) -> (i32, i32) {
    %c0_i32 = arith.constant 0 : i32
    %c0_i32_0 = arith.constant 0 : i32
    %c0_i32_1 = arith.constant 0 : i32
    return %c0_i32, %c0_i32_0 : i32, i32
  }
  func.func @transform_6(%arg0: i32) -> (i32, i32) {
    %c0_i32 = arith.constant 0 : i32
    %c0_i32_0 = arith.constant 0 : i32
    %c0_i32_1 = arith.constant 0 : i32
    return %c0_i32, %c0_i32_0 : i32, i32
  }
  func.func @transform_7(%arg0: i32) -> (i32, i32) {
    %c0_i32 = arith.constant 0 : i32
    %c0_i32_0 = arith.constant 0 : i32
    %c0_i32_1 = arith.constant 0 : i32
    return %c0_i32, %c0_i32_0 : i32, i32
  }
  func.func @transform_8(%arg0: i32) -> (i32, i32) {
    %c0_i32 = arith.constant 0 : i32
    %c0_i32_0 = arith.constant 0 : i32
    %c0_i32_1 = arith.constant 0 : i32
    return %c0_i32, %c0_i32_0 : i32, i32
  }
  func.func @transform_9(%arg0: i32) -> (i32, i32) {
    %c0_i32 = arith.constant 0 : i32
    %c0_i32_0 = arith.constant 0 : i32
    %c0_i32_1 = arith.constant 0 : i32
    return %c0_i32, %c0_i32_0 : i32, i32
  }
  func.func @transform_10(%arg0: i32) -> (i32, i32) {
    %c0_i32 = arith.constant 0 : i32
    %c0_i32_0 = arith.constant 0 : i32
    %c0_i32_1 = arith.constant 0 : i32
    return %c0_i32, %c0_i32_0 : i32, i32
  }
  func.func @transform_11(%arg0: i32) -> (i32, i32) {
    %c0_i32 = arith.constant 0 : i32
    %c0_i32_0 = arith.constant 0 : i32
    return %arg0, %c0_i32 : i32, i32
  }
}

</mosaic_0001>

<bundles_post_ra>
// kernel: tpu_custom_call.1
= control target key start
LH: loop header
LB: loop body
LE: loop exit
PB: predicated region body
PF: predicated region fallthrough
CT: control target
= control target key end

     0   :  { %s2107_s0 = inlined_call_operand.vmem [shape: f32[16,32], index: 0, kind: input, shape index: {}]   ;;  %s2108_s1 = inlined_call_operand.vmem [shape: f32[16,8], index: 1, kind: input, shape index: {}]   ;;  %s2109_s2 = inlined_call_operand.vmem [shape: f32[16,8], index: 2, kind: input, shape index: {}]   ;;  %s2110_s3 = inlined_call_operand.vmem [shape: f32[16,8], index: 3, kind: input, shape index: {}]   ;;  %s2111_s4 = inlined_call_operand.vmem [shape: bf16[32,112], index: 4, kind: input, shape index: {}]   ;;  %s2112_s5 = inlined_call_operand.vmem [shape: f32[1,112], index: 5, kind: input, shape index: {}]   ;;  %s2113_s6 = inlined_call_operand.vmem [shape: bf16[32,32], index: 6, kind: input, shape index: {}]   ;;  %s2114_s7 = inlined_call_operand.vmem [shape: bf16[32,128], index: 7, kind: input, shape index: {}]   ;;  %s2115_s8 = inlined_call_operand.vmem [shape: bf16[64,32], index: 8, kind: input, shape index: {}]   ;;  %s2116_s9 = inlined_call_operand.vmem [shape: f32[1,32], index: 9, kind: input, shape index: {}]   ;;  %s2117_s10 = inlined_call_operand.vmem [shape: f32[1,32], index: 10, kind: input, shape index: {}]   ;;  %s2118_s11 = inlined_call_operand.hbm [shape: f32[16,64], index: 11, kind: output, shape index: {}]  }
   0x1   :  { %2119 = sst [smem:[#allocation5_spill]] %s2107_s0 }
   0x2   :  { %16 = vsyncpa [#allocation3], 0 }
   0x3   :  { %18 = vsyncpa [#allocation3 + $0x1], 0  ;;  %s1734_s17 = smov 0   ;;  %s1736_s18 = smov 0  }
   0x4   :  { %s1738_s19 = smov 0   ;;  %s1740_s20 = smov 0  }
   0x5 LB: > { %s1755_s21 = sadd.s32 4294967295, %s1659_s20   ;;  %s1435_s22 = sadd.s32 4294967294, %s1659_s20   ;;  %s1659_s20 = sphi %s1740_s20, %s2126_s20   ;;  %s1655_s19 = sphi %s1738_s19, %s2125_s19   ;;  %s1651_s18 = sphi %s1736_s18, %s2124_s18   ;;  %s1647_s17 = sphi %s1734_s17, %s2123_s17  }
   0x6   : > { %s1759_s23 = sadd.s32 1, %s1659_s20   ;;  %s282_s24 = sadd.s32 1, %s1655_s19 }
   0x7   : > { %s279_s25 = ssub.s32 %s1659_s20, %s1759_s23  ;;  %p292_p0 = scmp.ne.s32.totalorder %s1655_s19, %s1651_s18 }
   0x8   : > { %p280_p1 = scmp.eq.s32.totalorder %s279_s25, 0  ;;  %p293_p2 = scmp.eq.s32.totalorder %s1755_s21, 1 }
   0x9   : > { %p298_p3 = scmp.ne.s32.totalorder %s1651_s18, %s1647_s17  ;;  %p299_p4 = scmp.eq.s32.totalorder %s1435_s22, 1 }
   0xa   : > { %s1770_s26 = scalar_select %p280_p1, %s1655_s19, %s282_s24  }
   0xb   : > { %p1772_p5 = por %p293_p2, %p292_p0  ;;  %p1776_p6 = por %p299_p4, %p298_p3 }
   0xc   : > { %p1438_p7 = scmp.ge.s32.totalorder %s1659_s20, 1  ;;  %p366_p8 = scmp.lt.s32.totalorder %s1659_s20, 3 }
   0xe   : > { %p367_p9 = pnand %p1438_p7, %p366_p8 }
   0xf   : > { %p417_p10 = scmp.lt.s32.totalorder (!%p367_p9), %s1755_s21, 1  ;;  %s2122_s0 = sld [smem:[#allocation5_spill]] (!%p367_p9) }
  0x10   : > { %370 = sbr.rel (%p367_p9) target bundleno = 1998 (0x7ce), region = 64  ;;  %s1661_s24 = smov (!%p367_p9), 8  }
  0x11   : > { %s1662_s13 = smov (!%p367_p9), 16   ;;  %s1668_s15 = smov (!%p367_p9), 120  }
  0x12   : > { %s1669_s16 = smov (!%p367_p9), 112   ;;  %s1670_s25 = smov (!%p367_p9), 104  }
  0x15   : > { %s418_s29 = scalar_select %p417_p10, %s1755_s21, 1  ;;  %vm436_vm0 = vcmask 261120   ;;  %v1664_v5 = vmov 32.0   ;;  %v1497_v9 = vld [vmem:[%s2111_s4 + $0x8] sm:$0xff]  ;;  %v1496_v11 = vld [vmem:[%s2111_s4] sm:$0xff]  ;;  %vm514_vm2 = vcmask 64512  }
  0x16   : > { %1571 = vrcp.f32 %v1664_v5  ;;  %495 = vmatpush.bf16.msra.mxu0 %v1497_v9  ;;  %v1568_v27 = vld [vmem:[%s2116_s9] ss:$0 sm:$0xff]  ;;  %vm516_vm6 = vcmask 130048   ;;  %vm518_vm7 = vcmask 195584   ;;  %v1671_v58 = vmov 1983009808  }
  0x17   : > { %s1784_s30 = sshll.u32 %s418_s29, 3  ;;  %s1665_s29 = smov 32   ;;  %v1569_v37 = vld [vmem:[%s2112_s5] ss:$0 sm:$0xff]  ;;  %v575_v59 = vunpack.c.l.s4 %v1671_v58  ;;  %vm570_vm8 = vcmask 1047556   ;;  %vm1001_vm9 = vcmask 1043456  }
  0x18   : > { %s420_s14 = scalar_lea.vmem %s2122_s0, %s1784_s30  ;;  %s428_s22 = scalar_lea.vmem %s2109_s2, %s1784_s30  ;;  %v1672_v63 = vmov 1934713408   ;;  %vm1302_vm13 = vcmask 523264   ;;  %vm1321_vm14 = vcmask 392192  }
  0x19   : > { %v1790_v0 = vld [vmem:[%s420_s14] sm:$0xff]  ;;  %s432_s12 = scalar_lea.vmem %s2110_s3, %s1784_s30  ;;  %s1663_s14 = smov 24   ;;  %v1848_v62 = vunpack.c.0.s8 %v575_v59 }
  0x1a   : > { %v435_v1 = vmul.f32 %v1790_v0, %v1790_v0  ;;  %v502_v2 = vld [vmem:[%s428_s22] sm:$0xff]  ;;  %496 = vmatpush.bf16.msra.mxu0 %v1496_v11  ;;  %s1667_s22 = smov 64  }
  0x1b   : > { %505 = vrot.lane.b32.xlu1 %v502_v2, %s1661_s24  ;;  %v503_v4 = vld [vmem:[%s432_s12] sm:$0xff]  ;;  %s1666_s12 = smov 96  }
  0x1c   : > { %v437_v3 = vsel %vm436_vm0, %v435_v1, 0.0  ;;  %v1572_v6 = vpop.eup %1571  ;;  %v599_v1 = vunpack.c.l.s4 %v1672_v63 }
  0x1d   : > { %438 = vadd.xlane.f32.xlu0 %v437_v3  ;;  %v441_v7 = vmul.f32 32.0, %v1572_v6  ;;  %vm445_vm1 = vweird.f32 %v1572_v6 }
  0x1f   : > { %v442_v8 = vsub.f32 1.0, %v441_v7 }
  0x21   : > { %v443_v10 = vmul.f32 %v1572_v6, %v442_v8 }
  0x23   : > { %525 = vrot.lane.b32.xlu1 %v503_v4, %s1662_s13  ;;  %v444_v12 = vadd.f32 %v1572_v6, %v443_v10 }
  0x25   : > { %v1813_v14 = vsel %vm445_vm1, %v1572_v6, %v444_v12 }
  0x31   : > { %522 = vrot.lane.b32.xlu0 %v503_v4, %s1661_s24 }
  0x39   : > { %511 = vrot.lane.b32.xlu0 %v502_v2, %s1663_s14 }
  0x8d   : > { %v506_v13 = vpop.permute.xlu1 %505 }
  0x8e   : > { %v515_v15 = vsel %vm514_vm2, %v502_v2, %v506_v13 }
  0x8f   : > { %545 = vrot.lane.b32.xlu1 %v515_v15, %s1665_s29  ;;  %s1617_s29 = scalar_lea.hbm %s2118_s11, 16 }
  0x90   : > { %v439_v16 = vpop.xlane.xlu0 %438 }
  0x91   : > { %v447_v17 = vmul.f32 %v1813_v14, %v439_v16 }
  0x93   : > { %v448_v18 = vadd.f32 1e-05, %v447_v17 }
  0x95   : > { %1573 = vrsqrt.f32 %v448_v18  ;;  %vm455_vm4 = vweird.f32 %v448_v18  ;;  %v526_v33 = vpop.permute.xlu1 %525 }
  0x9b   : > { %v1574_v19 = vpop.eup %1573 }
  0x9c   : > { %v450_v20 = vmul.f32 %v1574_v19, %v448_v18  ;;  %vm456_vm3 = vweird.f32 %v1574_v19 }
  0x9d   : > { %vm457_vm5 = vmor %vm455_vm4, %vm456_vm3 }
  0x9e   : > { %v451_v21 = vmul.f32 %v1574_v19, %v450_v20 }
  0xa0   : > { %v452_v22 = vmul.f32 0.5, %v451_v21 }
  0xa2   : > { %v453_v23 = vsub.f32 1.5, %v452_v22 }
  0xa3   : > { %v523_v24 = vpop.permute.xlu0 %522 }
  0xa4   : > { %v454_v25 = vmul.f32 %v1574_v19, %v453_v23  ;;  %v531_v26 = vsel %vm514_vm2, %v503_v4, %v523_v24 }
  0xa5   : > { %550 = vrot.lane.b32.xlu2 %v531_v26, %s1666_s12  ;;  %v532_v34 = vsel %vm516_vm6, %v531_v26, %v526_v33 }
  0xa6   : > { %v458_v28 = vsel %vm457_vm5, %v1574_v19, %v454_v25 }
  0xa7   : > { %v459_v29 = vmul.f32 %v458_v28, %v1790_v0 }
  0xa9   : > { %v464_v30 = vmul.f32 %v1568_v27, %v459_v29 }
  0xab   : > { %v465_v31 = vpack.c.bf16 %v464_v30, %v464_v30  ;;  %v512_v50 = vpop.permute.xlu0 %511 }
  0xad   : > { %1452 = vmatmul.msk.bf16.vlgmr.msra.gmra.mxu0 %vm436_vm0, %v465_v31  ;;  %528 = vrot.lane.b32.xlu2 %v503_v4, %s1663_s14 }
  0xff   : > { %v551_v32 = vpop.permute.xlu2 %550 }
 0x101   : > { %v546_v44 = vpop.permute.xlu1 %545 }
 0x107   : > { %v529_v35 = vpop.permute.xlu2 %528 }
 0x108   : > { %v533_v36 = vsel %vm518_vm7, %v532_v34, %v529_v35 }
 0x109   : > { %535 = vrot.lane.b32.xlu2 %v533_v36, %s1667_s22 }
 0x111   : > { %508 = vrot.lane.b32.xlu2 %v502_v2, %s1662_s13 }
 0x12a   : > { %v498_v38 = vpop.f32.mrf.mxu0 }
 0x12b   : > { %v1832_v39 = vadd.f32 %v1569_v37, %v498_v38 }
 0x12d   : > { %v553_v40 = vmul.f32 %v551_v32, %v1832_v39  ;;  %v548_v45 = vmul.f32 %v546_v44, %v1832_v39 }
 0x12f   : > { %555 = vrot.lane.b32.xlu1 %v553_v40, %s1667_s22 }
 0x132   : > { %v500_v41 = vpop.f32.mrf.mxu0 }
 0x163   : > { %v536_v42 = vpop.permute.xlu2 %535 }
 0x164   : > { %v538_v43 = vmul.f32 %v536_v42, %v1832_v39 }
 0x166   : > { %540 = vrot.lane.b32.xlu1 %v538_v43, %s1667_s22 }
 0x16b   : > { %v509_v48 = vpop.permute.xlu2 %508 }
 0x16c   : > { %v517_v49 = vsel %vm516_vm6, %v515_v15, %v509_v48  ;;  %v1856_v15 = vunpack.c.0.s8 %v599_v1 }
 0x16d   : > { %v519_v51 = vsel %vm518_vm7, %v517_v49, %v512_v50 }
 0x16e   : > { %v520_v52 = vmul.f32 %v519_v51, %v1832_v39 }
 0x1a1   : > { %v556_v46 = vpop.permute.xlu1 %555 }
 0x1a2   : > { %v1839_v47 = vadd.f32 %v556_v46, %v548_v45 }
 0x1a4   : > { %681 = vrot.lane.b32.xlu2 %v1839_v47, %s1668_s15 }
 0x1d8   : > { %v541_v53 = vpop.permute.xlu1 %540 }
 0x1d9   : > { %v543_v54 = vadd.f32 %v541_v53, %v520_v52 }
 0x1db   : > { %560 = vrot.lane.b32.xlu2 %v543_v54, %s1668_s15  ;;  %563 = vrot.lane.b32.xlu1 %v543_v54, %s1669_s16  ;;  %v572_v61 = vrot.slane %v543_v54, 4 }
 0x1e3   : > { %780 = vrot.lane.b32.xlu1 %v1832_v39, %s1668_s15  ;;  %s424_s15 = scalar_lea.vmem %s2108_s1, %s1784_s30  ;;  %s1673_s30 = smov 80  }
 0x1fe   : > { %v682_v55 = vpop.permute.xlu2 %681 }
 0x1ff   : > { %v1558_v56 = vpack.i.bf16 %v682_v55, %v1839_v47 }
 0x201   : > { %1559 = vrot.lane.b32.xlu0 %v1558_v56, %s1666_s12 }
 0x209   : > { %566 = vrot.lane.b32.xlu0 %v543_v54, %s1670_s25  ;;  %s1493_s25 = sshll.u32 %s1755_s21, 3 }
 0x235   : > { %v561_v11 = vpop.permute.xlu2 %560 }
 0x236   : > { %v584_v22 = vrot.slane %v561_v11, 4 }
 0x24d   : > { %v564_v57 = vpop.permute.xlu1 %563 }
 0x24e   : > { %v569_v60 = vrot.slane %v564_v57, 4  ;;  %v573_v4 = vsel %vm570_vm8, %v564_v57, %v572_v61 }
 0x24f   : > { %v581_v13 = vperm.slane %v573_v4, %v1848_v62 }
 0x250   : > { %v571_v3 = vsel %vm570_vm8, %v569_v60, %v543_v54 }
 0x251   : > { %v577_v12 = vperm.slane %v571_v3, %v1848_v62  ;;  %v608_v31 = vrot.slane %v581_v13, 4 }
 0x253   : > { %v596_v30 = vrot.slane %v577_v12, 4 }
 0x273   : > { %v1560_v2 = vpop.permute.xlu0 %1559 }
 0x274   : > { %v1562_v5 = vunpack.i.h.bf16 %v1560_v2  ;;  %v1561_v6 = vunpack.i.l.bf16 %v1560_v2 }
 0x276   : > { %v699_v7 = vrot.slane %v1562_v5, 4  ;;  %v704_v8 = vperm.slane %v1562_v5, %v1848_v62  ;;  %v689_v9 = vrot.slane %v1561_v6, 4  ;;  %v694_v10 = vperm.slane %v1561_v6, %v1848_v62 }
 0x278   : > { %v700_v16 = vsel %vm570_vm8, 0.0, %v699_v7  ;;  %v709_v17 = vrot.slane %v704_v8, 4  ;;  %v690_v18 = vsel %vm570_vm8, 0.0, %v689_v9  ;;  %v711_v19 = vrot.slane %v694_v10, 4 }
 0x279   : > { %v708_v20 = vperm.slane %v700_v16, %v1848_v62  ;;  %v698_v21 = vperm.slane %v690_v18, %v1848_v62 }
 0x27a   : > { %v710_v23 = vsel %vm570_vm8, %v709_v17, %v694_v10  ;;  %v712_v24 = vsel %vm570_vm8, %v704_v8, %v711_v19 }
 0x27b   : > { %v721_v25 = vrot.slane %v708_v20, 4  ;;  %v716_v26 = vperm.slane %v710_v23, %v1856_v15  ;;  %v720_v27 = vperm.slane %v712_v24, %v1856_v15  ;;  %v723_v28 = vrot.slane %v698_v21, 4  ;;  %v567_v29 = vpop.permute.xlu0 %566 }
 0x27c   : > { %v582_v32 = vrot.slane %v567_v29, 4  ;;  %v585_v33 = vsel %vm570_vm8, %v567_v29, %v584_v22 }
 0x27d   : > { %v722_v34 = vsel %vm570_vm8, %v721_v25, %v698_v21  ;;  %v724_v35 = vsel %vm570_vm8, %v708_v20, %v723_v28  ;;  %v733_v36 = vrot.slane %v716_v26, 4  ;;  %v735_v37 = vrot.slane %v720_v27, 4 }
 0x27e   : > { %v728_v38 = vperm.slane %v722_v34, %v1856_v15  ;;  %v732_v40 = vperm.slane %v724_v35, %v1856_v15  ;;  %v583_v41 = vsel %vm570_vm8, %v582_v32, %v561_v11  ;;  %v593_v42 = vperm.slane %v585_v33, %v1848_v62 }
 0x27f   : > { %v734_v43 = vsel %vm570_vm8, 0.0, %v733_v36  ;;  %v736_v44 = vsel %vm570_vm8, 0.0, %v735_v37  ;;  %v741_v45 = vsel %vm570_vm8, %v735_v37, %v716_v26  ;;  %v589_v46 = vperm.slane %v583_v41, %v1848_v62 }
 0x280   : > { %v737_v48 = vrot.slane %v728_v38, 4  ;;  %v739_v49 = vrot.slane %v732_v40, 4  ;;  %v746_v50 = vrot.slane %v736_v44, 4  ;;  %v606_v51 = vrot.slane %v593_v42, 4 }
 0x281   : > { %v594_v52 = vrot.slane %v589_v46, 4  ;;  %v597_v53 = vsel %vm570_vm8, %v589_v46, %v596_v30  ;;  %v609_v54 = vsel %vm570_vm8, %v593_v42, %v608_v31  ;;  %v745_v55 = vperm.slane %v741_v45, %v1848_v62 }
 0x282   : > { %v740_v56 = vsel %vm570_vm8, 0.0, %v739_v49  ;;  %v605_v57 = vperm.slane %v597_v53, %v1856_v15  ;;  %v607_v58 = vsel %vm570_vm8, %v606_v51, %v581_v13  ;;  %v617_v59 = vperm.slane %v609_v54, %v1856_v15 }
 0x283   : > { %v757_v60 = vrot.slane %v740_v56, 4  ;;  %v595_v61 = vsel %vm570_vm8, %v594_v52, %v577_v12  ;;  %v613_v63 = vperm.slane %v607_v58, %v1856_v15  ;;  %v738_v1 = vsel %vm570_vm8, 0.0, %v737_v48 }
 0x284   : > { %v601_v2 = vperm.slane %v595_v61, %v1856_v15  ;;  %v620_v3 = vrot.slane %v605_v57, 4  ;;  %v624_v4 = vrot.slane %v617_v59, 4  ;;  %v747_v5 = vsel %vm570_vm8, %v746_v50, %v734_v43 }
 0x285   : > { %v622_v6 = vrot.slane %v613_v63, 4  ;;  %v751_v7 = vperm.slane %v747_v5, %v1848_v62  ;;  %v752_v8 = vsel %vm570_vm8, %v739_v49, %v728_v38  ;;  %v758_v9 = vsel %vm570_vm8, %v757_v60, %v738_v1 }
 0x286   : > { %v618_v10 = vrot.slane %v601_v2, 4  ;;  %v621_v11 = vsel %vm570_vm8, 0.0, %v620_v3  ;;  %v625_v12 = vsel %vm570_vm8, 0.0, %v624_v4  ;;  %v626_v13 = vsel %vm570_vm8, %v620_v3, %v601_v2 }
 0x287   : > { %v623_v16 = vsel %vm570_vm8, 0.0, %v622_v6  ;;  %v631_v17 = vrot.slane %v621_v11, 4  ;;  %v637_v18 = vsel %vm570_vm8, %v624_v4, %v613_v63  ;;  %v642_v19 = vrot.slane %v625_v12, 4 }
 0x288   : > { %v619_v20 = vsel %vm570_vm8, 0.0, %v618_v10  ;;  %v641_v21 = vperm.slane %v637_v18, %v1848_v62  ;;  %v756_v22 = vperm.slane %v752_v8, %v1848_v62  ;;  %v762_v23 = vperm.slane %v758_v9, %v1848_v62 }
 0x289   : > { %v643_v24 = vsel %vm570_vm8, %v642_v19, %v623_v16  ;;  %v763_v25 = vrot.slane %v751_v7, 4  ;;  %v630_v26 = vperm.slane %v626_v13, %v1848_v62  ;;  %v632_v27 = vsel %vm570_vm8, %v631_v17, %v619_v20  ;;  %v938_v16 = vld [vmem:[%s424_s15] sm:$0xff] }
 0x28a   : > { %v647_v28 = vperm.slane %v643_v24, %v1848_v62  ;;  %v662_v29 = vrot.slane %v641_v21, 4  ;;  %v769_v30 = vrot.slane %v762_v23, 4  ;;  %v636_v31 = vperm.slane %v632_v27, %v1848_v62 }
 0x28b   : > { %v764_v32 = vsel %vm570_vm8, %v763_v25, %v745_v55  ;;  %v650_v33 = vrot.slane %v630_v26, 4 }
 0x28c   : > { %v768_v34 = vperm.slane %v764_v32, %v1856_v15  ;;  %v770_v35 = vsel %vm570_vm8, %v769_v30, %v756_v22  ;;  %v663_v36 = vsel %vm570_vm8, %v647_v28, %v662_v29  ;;  %v648_v37 = vrot.slane %v636_v31, 4  ;;  %v781_v32 = vpop.permute.xlu1 %780 }
 0x28d   : > { %v774_v38 = vperm.slane %v770_v35, %v1856_v15  ;;  %v651_v40 = vsel %vm570_vm8, %v636_v31, %v650_v33  ;;  %v671_v41 = vperm.slane %v663_v36, %v1856_v15  ;;  %v660_v42 = vrot.slane %v647_v28, 4 }
 0x28e   : > { %v777_v43 = vrot.slane %v768_v34, 4  ;;  %v659_v44 = vperm.slane %v651_v40, %v1856_v15  ;;  %v649_v45 = vsel %vm570_vm8, %v648_v37, %v630_v26  ;;  %v1563_v33 = vpack.i.bf16 %v781_v32, %v1832_v39 }
 0x28f   : > { %v775_v46 = vrot.slane %v774_v38, 4  ;;  %v676_v48 = vrot.slane %v671_v41, 4  ;;  %v655_v49 = vperm.slane %v649_v45, %v1856_v15  ;;  %v661_v50 = vsel %vm570_vm8, %v660_v42, %v641_v21 }
 0x290   : > { %v778_v51 = vsel %vm570_vm8, %v774_v38, %v777_v43  ;;  %v678_v52 = vrot.slane %v659_v44, 4  ;;  %v667_v53 = vperm.slane %v661_v50, %v1856_v15 }
 0x291   : > { %v883_v54 = vpack.c.bf16 %v778_v51, %v778_v51  ;;  %v776_v55 = vsel %vm570_vm8, %v775_v46, %v768_v34  ;;  %v677_v56 = vsel %vm570_vm8, %v676_v48, %v659_v44  ;;  %v674_v57 = vrot.slane %v655_v49, 4 }
 0x292   : > { %v882_v58 = vpack.c.bf16 %v776_v55, %v776_v55  ;;  %v679_v59 = vsel %vm570_vm8, %v671_v41, %v678_v52  ;;  %v880_v60 = vpack.c.bf16 %v677_v56, %v677_v56  ;;  %v672_v61 = vrot.slane %v667_v53, 4 }
 0x293   : > { %v918_v63 = vsel %vm514_vm2, %v883_v54, 0  ;;  %v881_v1 = vpack.c.bf16 %v679_v59, %v679_v59  ;;  %v675_v2 = vsel %vm570_vm8, %v667_v53, %v674_v57 }
 0x294   : > { %927 = vmatpush.bf16.xpose.msra.mxu2 %v918_v63  ;;  %v893_v3 = vsel %vm514_vm2, %v882_v58, 0  ;;  %v673_v4 = vsel %vm570_vm8, %v672_v61, %v655_v49  ;;  %v879_v5 = vpack.c.bf16 %v675_v2, %v675_v2  ;;  %v911_v6 = vunpack.c.l.b16 %v880_v60 }
 0x295   : > { %902 = vmatpush.bf16.xpose.msra.mxu1 %v893_v3  ;;  %v912_v7 = vunpack.c.l.b16 %v881_v1  ;;  %v878_v8 = vpack.c.bf16 %v673_v4, %v673_v4 }
 0x296   : > { %v887_v9 = vunpack.c.l.b16 %v879_v5 }
 0x297   : > { %v913_v10 = vpack.c.b16 %v912_v7, %v911_v6  ;;  %v886_v11 = vunpack.c.l.b16 %v878_v8 }
 0x299   : > { %v888_v12 = vpack.c.b16 %v887_v9, %v886_v11 }
 0x29b   : > { %1454 = vmatmul.msk.bf16.vlgmr.msra.gmra.mxu2 %vm514_vm2, %v913_v10 }
 0x29c   : > { %1453 = vmatmul.msk.bf16.vlgmr.msra.gmra.mxu1 %vm514_vm2, %v888_v12 }
 0x319   : > { %v904_v13 = vpop.f32.mrf.mxu1 }
 0x31a   : > { %v934_v17 = vmul.f32 0.35355338, %v904_v13 }
 0x31c   : > { %v939_v18 = vadd.f32 %v938_v16, %v934_v17 }
 0x31e   : > { %v929_v19 = vpop.f32.mrf.mxu2  ;;  %v943_v20 = vsel %vm514_vm2, %v939_v18, -inf }
 0x31f   : > { %v936_v21 = vmul.f32 0.35355338, %v929_v19  ;;  %944 = vmax.xlane.f32.xlu2 %v943_v20 }
 0x321   : > { %v906_v22 = vpop.f32.mrf.mxu1  ;;  %v941_v23 = vadd.f32 %v938_v16, %v936_v21 }
 0x322   : > { %v935_v24 = vmul.f32 0.35355338, %v906_v22 }
 0x323   : > { %v949_v25 = vsel %vm514_vm2, %v941_v23, -inf }
 0x324   : > { %950 = vmax.xlane.f32.xlu1 %v949_v25  ;;  %v940_v26 = vadd.f32 %v938_v16, %v935_v24 }
 0x326   : > { %v931_v27 = vpop.f32.mrf.mxu2  ;;  %v946_v28 = vsel %vm514_vm2, %v940_v26, -inf }
 0x327   : > { %v937_v29 = vmul.f32 0.35355338, %v931_v27  ;;  %947 = vmax.xlane.f32.xlu0 %v946_v28 }
 0x329   : > { %v942_v30 = vadd.f32 %v938_v16, %v937_v29 }
 0x32b   : > { %v952_v31 = vsel %vm514_vm2, %v942_v30, -inf }
 0x32c   : > { %953 = vmax.xlane.f32.xlu2 %v952_v31 }
 0x33b   : > { %1564 = vrot.lane.b32.xlu0 %v1563_v33, %s1673_s30 }
 0x392   : > { %v945_v34 = vpop.xlane.xlu2 %944 }
 0x393   : > { %v955_v35 = vsub.f32 %v939_v18, %v945_v34 }
 0x395   : > { %v959_v36 = vmul.f32 1.442695, %v955_v35 }
 0x397   : > { %1575 = vpow2.f32 %v959_v36  ;;  %v951_v37 = vpop.xlane.xlu1 %950 }
 0x398   : > { %v957_v38 = vsub.f32 %v941_v23, %v951_v37 }
 0x39a   : > { %v963_v40 = vmul.f32 1.442695, %v957_v38  ;;  %v948_v41 = vpop.xlane.xlu0 %947 }
 0x39b   : > { %v956_v42 = vsub.f32 %v940_v26, %v948_v41 }
 0x39c   : > { %1577 = vpow2.f32 %v963_v40 }
 0x39d   : > { %v1937_v43 = vpop.eup %1575  ;;  %v961_v44 = vmul.f32 1.442695, %v956_v42 }
 0x39e   : > { %v967_v45 = vsel %vm514_vm2, %v1937_v43, 0.0 }
 0x39f   : > { %1579 = vpow2.f32 %v961_v44  ;;  %v954_v46 = vpop.xlane.xlu2 %953  ;;  %968 = vadd.xlane.f32.xlu2 %v967_v45 }
 0x3a0   : > { %v958_v48 = vsub.f32 %v942_v30, %v954_v46 }
 0x3a2   : > { %v965_v49 = vmul.f32 1.442695, %v958_v48  ;;  %v1941_v50 = vpop.eup %1577 }
 0x3a3   : > { %v973_v52 = vsel %vm514_vm2, %v1941_v50, 0.0 }
 0x3a4   : > { %1581 = vpow2.f32 %v965_v49 }
 0x3a5   : > { %v1943_v51 = vpop.eup %1579 }
 0x3a6   : > { %v970_v53 = vsel %vm514_vm2, %v1943_v51, 0.0 }
 0x3a7   : > { %974 = vadd.xlane.f32.xlu2 %v973_v52  ;;  %971 = vadd.xlane.f32.xlu1 %v970_v53 }
 0x3aa   : > { %v1949_v54 = vpop.eup %1581 }
 0x3ab   : > { %v976_v58 = vsel %vm514_vm2, %v1949_v54, 0.0 }
 0x3ad   : > { %v1565_v55 = vpop.permute.xlu0 %1564 }
 0x3ae   : > { %v1567_v56 = vunpack.i.h.bf16 %v1565_v55  ;;  %v1566_v57 = vunpack.i.l.bf16 %v1565_v55 }
 0x3af   : > { %977 = vadd.xlane.f32.xlu1 %v976_v58 }
 0x3b0   : > { %v798_v59 = vrot.slane %v1567_v56, 4  ;;  %v803_v60 = vperm.slane %v1567_v56, %v1848_v62  ;;  %v788_v61 = vrot.slane %v1566_v57, 4  ;;  %v793_v63 = vperm.slane %v1566_v57, %v1848_v62 }
 0x3b2   : > { %v799_v1 = vsel %vm570_vm8, 0.0, %v798_v59  ;;  %v808_v2 = vrot.slane %v803_v60, 4  ;;  %v789_v3 = vsel %vm570_vm8, 0.0, %v788_v61  ;;  %v810_v4 = vrot.slane %v793_v63, 4 }
 0x3b3   : > { %v807_v5 = vperm.slane %v799_v1, %v1848_v62  ;;  %v797_v6 = vperm.slane %v789_v3, %v1848_v62 }
 0x3b4   : > { %v809_v7 = vsel %vm570_vm8, %v808_v2, %v793_v63  ;;  %v811_v8 = vsel %vm570_vm8, %v803_v60, %v810_v4 }
 0x3b5   : > { %v820_v9 = vrot.slane %v807_v5, 4  ;;  %v815_v10 = vperm.slane %v809_v7, %v1856_v15  ;;  %v819_v11 = vperm.slane %v811_v8, %v1856_v15  ;;  %v822_v12 = vrot.slane %v797_v6, 4 }
 0x3b7   : > { %v821_v13 = vsel %vm570_vm8, %v820_v9, %v797_v6  ;;  %v823_v16 = vsel %vm570_vm8, %v807_v5, %v822_v12  ;;  %v832_v17 = vrot.slane %v815_v10, 4  ;;  %v834_v18 = vrot.slane %v819_v11, 4 }
 0x3b8   : > { %v827_v19 = vperm.slane %v821_v13, %v1856_v15  ;;  %v831_v20 = vperm.slane %v823_v16, %v1856_v15 }
 0x3b9   : > { %v835_v21 = vsel %vm570_vm8, 0.0, %v834_v18  ;;  %v833_v25 = vsel %vm570_vm8, 0.0, %v832_v17  ;;  %v840_v27 = vsel %vm570_vm8, %v834_v18, %v815_v10 }
 0x3ba   : > { %v836_v22 = vrot.slane %v827_v19, 4  ;;  %v838_v23 = vrot.slane %v831_v20, 4  ;;  %v845_v24 = vrot.slane %v835_v21, 4  ;;  %v844_v32 = vperm.slane %v840_v27, %v1848_v62 }
 0x3bc   : > { %v839_v26 = vsel %vm570_vm8, 0.0, %v838_v23  ;;  %v846_v28 = vsel %vm570_vm8, %v845_v24, %v833_v25  ;;  %v837_v31 = vsel %vm570_vm8, 0.0, %v836_v22  ;;  %v851_v33 = vsel %vm570_vm8, %v838_v23, %v827_v19 }
 0x3bd   : > { %v856_v29 = vrot.slane %v839_v26, 4  ;;  %v850_v30 = vperm.slane %v846_v28, %v1848_v62  ;;  %v855_v38 = vperm.slane %v851_v33, %v1848_v62 }
 0x3bf   : > { %v857_v34 = vsel %vm570_vm8, %v856_v29, %v837_v31  ;;  %v862_v35 = vrot.slane %v850_v30, 4 }
 0x3c0   : > { %v861_v36 = vperm.slane %v857_v34, %v1848_v62 }
 0x3c1   : > { %v863_v37 = vsel %vm570_vm8, %v862_v35, %v844_v32 }
 0x3c2   : > { %v867_v40 = vperm.slane %v863_v37, %v1856_v15  ;;  %v868_v41 = vrot.slane %v861_v36, 4 }
 0x3c4   : > { %v869_v42 = vsel %vm570_vm8, %v868_v41, %v855_v38  ;;  %v876_v44 = vrot.slane %v867_v40, 4 }
 0x3c5   : > { %v873_v45 = vperm.slane %v869_v42, %v1856_v15 }
 0x3c7   : > { %v874_v46 = vrot.slane %v873_v45, 4  ;;  %v877_v48 = vsel %vm570_vm8, %v873_v45, %v876_v44 }
 0x3c8   : > { %v992_v52 = vpack.c.bf16 %v877_v48, %v877_v48 }
 0x3c9   : > { %v875_v49 = vsel %vm570_vm8, %v874_v46, %v867_v40 }
 0x3ca   : > { %v991_v53 = vpack.c.bf16 %v875_v49, %v875_v49  ;;  %v1028_v56 = vsel %vm1001_vm9, %v992_v52, 0 }
 0x3cc   : > { %v1003_v55 = vsel %vm1001_vm9, %v991_v53, 0 }
 0x3cd   : > { %1012 = vmatpush.bf16.msra.mxu3 %v1003_v55 }
 0x3d1   : > { %1037 = vmatpush.bf16.msrb.mxu3 %v1028_v56 }
 0x412   : > { %v969_v57 = vpop.xlane.xlu2 %968 }
 0x413   : > { %1583 = vrcp.f32 %v969_v57 }
 0x419   : > { %v1584_v59 = vpop.eup %1583 }
 0x41a   : > { %v972_v58 = vpop.xlane.xlu1 %971  ;;  %v983_v60 = vmul.f32 %v1584_v59, %v1937_v43  ;;  %v975_v1 = vpop.xlane.xlu2 %974 }
 0x41b   : > { %1585 = vrcp.f32 %v972_v58 }
 0x41c   : > { %v987_v3 = vpack.c.bf16 %v983_v60, %v983_v60 }
 0x41e   : > { %v995_v5 = vunpack.c.l.b16 %v987_v3 }
 0x421   : > { %v1586_v61 = vpop.eup %1585 }
 0x422   : > { %v978_v63 = vpop.xlane.xlu1 %977  ;;  %v984_v2 = vmul.f32 %v1586_v61, %v1943_v51 }
 0x423   : > { %1587 = vrcp.f32 %v978_v63 }
 0x424   : > { %v988_v4 = vpack.c.bf16 %v984_v2, %v984_v2  ;;  %1589 = vrcp.f32 %v975_v1 }
 0x426   : > { %v996_v6 = vunpack.c.l.b16 %v988_v4 }
 0x428   : > { %v997_v7 = vpack.c.b16 %v996_v6, %v995_v5 }
 0x429   : > { %v1588_v8 = vpop.eup %1587 }
 0x42a   : > { %1455 = vmatmul.msk.bf16.vlgmr.msra.gmra.mxu3 %vm514_vm2, %v997_v7  ;;  %v1590_v9 = vpop.eup %1589  ;;  %v986_v10 = vmul.f32 %v1588_v8, %v1949_v54 }
 0x42b   : > { %v985_v43 = vmul.f32 %v1590_v9, %v1941_v50 }
 0x42c   : > { %v990_v11 = vpack.c.bf16 %v986_v10, %v986_v10 }
 0x42d   : > { %v989_v12 = vpack.c.bf16 %v985_v43, %v985_v43 }
 0x42e   : > { %v1022_v13 = vunpack.c.l.b16 %v990_v11 }
 0x42f   : > { %v1021_v16 = vunpack.c.l.b16 %v989_v12 }
 0x431   : > { %v1023_v51 = vpack.c.b16 %v1022_v13, %v1021_v16 }
 0x43a   : > { %1456 = vmatmul.msk.bf16.vlgmr.msrb.gmra.mxu3 %vm514_vm2, %v1023_v51 }
 0x4ad   : > { %v1014_v17 = vpop.f32.mrf.mxu3 }
 0x4ae   : > { %v1046_v20 = vrot.slane %v1014_v17, 4 }
 0x4b5   : > { %v1016_v18 = vpop.f32.mrf.mxu3 }
 0x4b6   : > { %v1058_v24 = vrot.slane %v1016_v18, 4 }
 0x4bd   : > { %v1039_v19 = vpop.f32.mrf.mxu3 }
 0x4be   : > { %v1044_v21 = vrot.slane %v1039_v19, 4  ;;  %v1047_v22 = vsel %vm570_vm8, %v1039_v19, %v1046_v20 }
 0x4bf   : > { %v1055_v54 = vperm.slane %v1047_v22, %v1848_v62 }
 0x4c0   : > { %v1045_v23 = vsel %vm570_vm8, %v1044_v21, %v1014_v17 }
 0x4c1   : > { %v1051_v50 = vperm.slane %v1045_v23, %v1848_v62  ;;  %v1082_v28 = vrot.slane %v1055_v54, 4 }
 0x4c3   : > { %v1070_v31 = vrot.slane %v1051_v50, 4 }
 0x4c5   : > { %v1041_v25 = vpop.f32.mrf.mxu3 }
 0x4c6   : > { %v1056_v26 = vrot.slane %v1041_v25, 4  ;;  %v1059_v27 = vsel %vm570_vm8, %v1041_v25, %v1058_v24 }
 0x4c7   : > { %v1067_v29 = vperm.slane %v1059_v27, %v1848_v62 }
 0x4c8   : > { %v1057_v30 = vsel %vm570_vm8, %v1056_v26, %v1016_v18 }
 0x4c9   : > { %v1063_v32 = vperm.slane %v1057_v30, %v1848_v62  ;;  %v1080_v33 = vrot.slane %v1067_v29, 4  ;;  %v1083_v34 = vsel %vm570_vm8, %v1067_v29, %v1082_v28 }
 0x4ca   : > { %v1091_v35 = vperm.slane %v1083_v34, %v1856_v15 }
 0x4cb   : > { %v1068_v36 = vrot.slane %v1063_v32, 4  ;;  %v1071_v37 = vsel %vm570_vm8, %v1063_v32, %v1070_v31  ;;  %v1081_v38 = vsel %vm570_vm8, %v1080_v33, %v1055_v54  ;;  %v1499_v54 = vld [vmem:[%s2113_s6 + $0x8] sm:$0xff] }
 0x4cc   : > { %v1079_v40 = vperm.slane %v1071_v37, %v1856_v15  ;;  %v1087_v41 = vperm.slane %v1081_v38, %v1856_v15  ;;  %v1098_v42 = vrot.slane %v1091_v35, 4  ;;  %1195 = vmatpush.bf16.msrb.mxu0 %v1499_v54  ;;  %v1501_v35 = vld [vmem:[%s2114_s7 + $0x8] sm:$0xff] }
 0x4cd   : > { %v1069_v44 = vsel %vm570_vm8, %v1068_v36, %v1051_v50  ;;  %1251 = vmatpush.bf16.msrb.mxu1 %v1501_v35  ;;  %v1500_v36 = vld [vmem:[%s2114_s7] sm:$0xff] }
 0x4ce   : > { %v1075_v45 = vperm.slane %v1069_v44, %v1856_v15  ;;  %v1094_v46 = vrot.slane %v1079_v40, 4  ;;  %v1096_v48 = vrot.slane %v1087_v41, 4  ;;  %v1099_v49 = vsel %vm570_vm8, 0.0, %v1098_v42 }
 0x4cf   : > { %v1111_v52 = vsel %vm570_vm8, %v1098_v42, %v1087_v41  ;;  %v1116_v53 = vrot.slane %v1099_v49, 4 }
 0x4d0   : > { %v1092_v55 = vrot.slane %v1075_v45, 4  ;;  %v1095_v56 = vsel %vm570_vm8, 0.0, %v1094_v46  ;;  %v1097_v57 = vsel %vm570_vm8, 0.0, %v1096_v48  ;;  %v1115_v58 = vperm.slane %v1111_v52, %v1848_v62  ;;  %v1570_v48 = vld [vmem:[%s2117_s10] ss:$0 sm:$0xff] }
 0x4d1   : > { %v1105_v59 = vrot.slane %v1095_v56, 4  ;;  %v1100_v60 = vsel %vm570_vm8, %v1094_v46, %v1075_v45  ;;  %v1117_v61 = vsel %vm570_vm8, %v1116_v53, %v1097_v57  ;;  %1252 = vmatpush.bf16.msrb.mxu1 %v1500_v36  ;;  %v1504_v56 = vld [vmem:[%s2115_s8 + $0x10] sm:$0xff]  ;;  %v1503_v57 = vld [vmem:[%s2115_s8 + $0x8] sm:$0xff] }
 0x4d2   : > { %v1093_v63 = vsel %vm570_vm8, 0.0, %v1092_v55  ;;  %v1104_v1 = vperm.slane %v1100_v60, %v1848_v62  ;;  %v1121_v2 = vperm.slane %v1117_v61, %v1848_v62  ;;  %v1136_v3 = vrot.slane %v1115_v58, 4  ;;  %v1502_v61 = vld [vmem:[%s2115_s8] sm:$0xff] }
 0x4d3   : > { %v1106_v4 = vsel %vm570_vm8, %v1105_v59, %v1093_v63 }
 0x4d4   : > { %v1110_v5 = vperm.slane %v1106_v4, %v1848_v62  ;;  %v1124_v6 = vrot.slane %v1104_v1, 4  ;;  %v1137_v7 = vsel %vm570_vm8, %v1121_v2, %v1136_v3  ;;  %v1134_v8 = vrot.slane %v1121_v2, 4 }
 0x4d5   : > { %v1145_v9 = vperm.slane %v1137_v7, %v1856_v15 }
 0x4d6   : > { %v1125_v10 = vsel %vm570_vm8, %v1110_v5, %v1124_v6  ;;  %v1122_v43 = vrot.slane %v1110_v5, 4  ;;  %v1135_v11 = vsel %vm570_vm8, %v1134_v8, %v1115_v58 }
 0x4d7   : > { %v1133_v12 = vperm.slane %v1125_v10, %v1856_v15  ;;  %v1150_v13 = vrot.slane %v1145_v9, 4  ;;  %v1141_v16 = vperm.slane %v1135_v11, %v1856_v15 }
 0x4d8   : > { %v1123_v51 = vsel %vm570_vm8, %v1122_v43, %v1104_v1 }
 0x4d9   : > { %v1151_v62 = vsel %vm570_vm8, %v1150_v13, %v1133_v12  ;;  %v1152_v17 = vrot.slane %v1133_v12, 4  ;;  %v1129_v18 = vperm.slane %v1123_v51, %v1856_v15  ;;  %v1146_v19 = vrot.slane %v1141_v16, 4  ;;  %v1498_v15 = vld [vmem:[%s2113_s6] sm:$0xff] }
 0x4da   : > { %1159 = vrot.lane.b32.xlu0 %v1151_v62, %s1662_s13  ;;  %1196 = vmatpush.bf16.msrb.mxu0 %v1498_v15 }
 0x4db   : > { %v1153_v20 = vsel %vm570_vm8, %v1145_v9, %v1152_v17  ;;  %v1148_v21 = vrot.slane %v1129_v18, 4  ;;  %v1147_v22 = vsel %vm570_vm8, %v1146_v19, %v1129_v18 }
 0x4dc   : > { %1163 = vrot.lane.b32.xlu1 %v1153_v20, %s1663_s14 }
 0x4dd   : > { %v1149_v23 = vsel %vm570_vm8, %v1141_v16, %v1148_v21 }
 0x4de   : > { %1155 = vrot.lane.b32.xlu2 %v1149_v23, %s1661_s24  ;;  %s1335_s24 = scalar_lea.hbm %s2118_s11, %s1493_s25 }
 0x4df   : > { %s1339_s15 = sshll.u32 %s1335_s24, 4  ;;  %s1340_s15 = int_to_ptr.hbm [resolvable:$true] %s1339_s15 }
 0x4e0   : > { %s1611_s30 = sshra.s32 %s1340_s15, 4  ;;  %s1612_s30 = int_to_ptr.hbm [resolvable:$true] %s1611_s30 }
 0x4e1   : > { %s1613_s25 = scalar_lea.hbm %s1612_s30, 8  ;;  %p1618_p0 = scmp.lt.s32.totalorder %s1612_s30, %s2118_s11 }
 0x4e2   : > { %p1614_p11 = scmp.ne.s32.totalorder %s1612_s30, %s1613_s25  ;;  %p1619_p1 = scmp.lt.s32.totalorder %s1617_s29, %s1613_s25 }
 0x4e4   : > { %p1615_p12 = pnand %p1614_p11, %p1772_p5  ;;  %p1620_p2 = por %p1619_p1, %p1618_p0 }
 0x4e6   : > { %p1616_p13 = pneg %p1615_p12 }
 0x4e8   : > { %p1621_p3 = pnand %p1620_p2, %p1616_p13 }
 0x538   : > { %v1156_v24 = vpop.permute.xlu2 %1155 }
 0x539   : > { %v1166_v50 = vsel %vm514_vm2, %v1147_v22, %v1156_v24 }
 0x54c   : > { %v1160_v25 = vpop.permute.xlu0 %1159 }
 0x54d   : > { %v1167_v26 = vsel %vm516_vm6, %v1166_v50, %v1160_v25 }
 0x54e   : > { %v1164_v27 = vpop.permute.xlu1 %1163 }
 0x54f   : > { %v1168_v28 = vsel %vm518_vm7, %v1167_v26, %v1164_v27 }
 0x550   : > { %v1169_v29 = vpack.c.bf16 %v1168_v28, %v1168_v28 }
 0x552   : > { %1465 = vmatmul.msk.bf16.vlgmr.msrb.gmra.mxu0 %vm436_vm0, %v1169_v29 }
 0x5cf   : > { %v1198_v30 = vpop.f32.mrf.mxu0 }
 0x5d0   : > { %v1202_v31 = vadd.f32 %v1198_v30, %v1790_v0 }
 0x5d2   : > { %v1203_v32 = vmul.f32 %v1202_v31, %v1202_v31 }
 0x5d4   : > { %v1204_v33 = vsel %vm436_vm0, %v1203_v32, 0.0 }
 0x5d5   : > { %1205 = vadd.xlane.f32.xlu0 %v1204_v33 }
 0x5d7   : > { %v1200_v34 = vpop.f32.mrf.mxu0 }
 0x648   : > { %v1206_v37 = vpop.xlane.xlu0 %1205 }
 0x649   : > { %v1207_v38 = vmul.f32 %v1206_v37, %v1813_v14  ;;  %v1505_v14 = vld [vmem:[%s2115_s8 + $0x18] sm:$0xff] }
 0x64a   : > { %1310 = vmatpush.bf16.msrb.mxu2 %v1505_v14 }
 0x64b   : > { %v1208_v40 = vadd.f32 1e-05, %v1207_v38 }
 0x64d   : > { %1591 = vrsqrt.f32 %v1208_v40  ;;  %vm1215_vm11 = vweird.f32 %v1208_v40 }
 0x64e   : > { %1311 = vmatpush.bf16.msrb.mxu2 %v1504_v56 }
 0x652   : > { %1312 = vmatpush.bf16.msrb.mxu2 %v1503_v57 }
 0x653   : > { %v1592_v0 = vpop.eup %1591 }
 0x654   : > { %v1210_v41 = vmul.f32 %v1592_v0, %v1208_v40  ;;  %vm1216_vm10 = vweird.f32 %v1592_v0 }
 0x655   : > { %vm1217_vm12 = vmor %vm1215_vm11, %vm1216_vm10 }
 0x656   : > { %v1211_v42 = vmul.f32 %v1592_v0, %v1210_v41  ;;  %1313 = vmatpush.bf16.msrb.mxu2 %v1502_v61 }
 0x658   : > { %v1212_v44 = vmul.f32 0.5, %v1211_v42 }
 0x65a   : > { %v1213_v45 = vsub.f32 1.5, %v1212_v44 }
 0x65c   : > { %v1214_v46 = vmul.f32 %v1592_v0, %v1213_v45 }
 0x65e   : > { %v1218_v49 = vsel %vm1217_vm12, %v1592_v0, %v1214_v46 }
 0x65f   : > { %v1219_v52 = vmul.f32 %v1218_v49, %v1202_v31 }
 0x661   : > { %v1224_v53 = vmul.f32 %v1570_v48, %v1219_v52 }
 0x663   : > { %v1225_v55 = vpack.c.bf16 %v1224_v53, %v1224_v53 }
 0x665   : > { %1474 = vmatmul.msk.bf16.vlgmr.msrb.gmra.mxu1 %vm436_vm0, %v1225_v55 }
 0x6e2   : > { %v1254_v58 = vpop.f32.mrf.mxu1 }
 0x6e3   : > { %1265 = vrot.lane.b32.xlu2 %v1254_v58, %s1667_s22  ;;  %v1258_v60 = vsub.f32 0.0, %v1254_v58  ;;  %s414_s22 = sand.u32 1, %s1651_s18  }
 0x6e4   : > { %s1439_s16 = sshll.u32 %s414_s22, 3  ;;  %s1325_s21 = scalar_lea.sflag [#allocation3], %s414_s22 }
 0x6e5   : > { %v1259_v63 = vmul.f32 1.442695, %v1258_v60  ;;  %s416_s13 = scalar_lea.vmem [#allocation2], %s1439_s16 }
 0x6e6   : > { %s1337_s14 = sshll.u32 %s416_s13, 4  ;;  %s1338_s14 = int_to_ptr.vmem [resolvable:$true] %s1337_s14 }
 0x6e7   : > { %1593 = vpow2.f32 %v1259_v63 }
 0x6ea   : > { %v1256_v59 = vpop.f32.mrf.mxu1 }
 0x6ed   : > { %v1594_v1 = vpop.eup %1593 }
 0x6ee   : > { %v1261_v2 = vadd.f32 1.0, %v1594_v1 }
 0x6f0   : > { %1595 = vrcp.f32 %v1261_v2 }
 0x6f6   : > { %v1596_v3 = vpop.eup %1595 }
 0x6f7   : > { %v1263_v4 = vmul.f32 %v1596_v3, %v1254_v58 }
 0x73d   : > { %v1266_v5 = vpop.permute.xlu2 %1265 }
 0x73e   : > { %v1268_v6 = vmul.f32 %v1266_v5, %v1263_v4 }
 0x740   : > { %v1269_v7 = vpack.c.bf16 %v1268_v6, %v1268_v6 }
 0x742   : > { %1491 = vmatmul.msk.bf16.vlgmr.msrb.gmra.mxu2 %vm1302_vm13, %v1269_v7 }
 0x7c5   : > { %v1315_v8 = vpop.f32.mrf.mxu2 }
 0x7c6   : > { %v1319_v9 = vadd.f32 %v1315_v8, %v1202_v31 }
 0x7c8   : > { %v1320_v10 = vsel %vm436_vm0, %v1319_v9, %v1839_v47 }
 0x7c9   : > { %v1322_v43 = vsel %vm1321_vm14, %v1320_v10, %v1832_v39 }
 0x7ca   : > { %1323 = vst.msk [vmem:[%s416_s13] sm:$0xff] %vm1302_vm13, %v1322_v43 }
 0x7cb   : > { %1624 = shalt.err (!%p1621_p3)
}
 0x7cc   : > { %1506 = dma.vmem_to_hbm [thread:$0]  (%p1772_p5), %s1338_s14, 128, %s1340_s15, %s1325_s21  }
 0x7cd   : > { %v1317_v39 = vpop.f32.mrf.mxu2 }
 0x7ce PF: > { %p1512_p4 = scmp.ge.s32.totalorder %s1659_s20, 2  ;;  %s1351_s22 = sand.u32 1, %s1647_s17  }
 0x7cf   : > { %s1352_s13 = scalar_lea.sflag [#allocation3], %s1351_s22 }
 0x7d0   : > { %p1509_p7 = pnand %p1512_p4, %p1776_p6 }
 0x7d2   : > { %p1510_p8 = pneg %p1509_p7 }
 0x7d4   : > { %1642 = dma.done.wait (%p1510_p8), %s1352_s13, 128  }
 0x7d5   : > { %1644 = vsyncadd (%p1510_p8), %s1352_s13, 4294967168  ;;  %p21_p9 = scmp.ge.s32.totalorder %s1759_s23, 4   ;;  %s2123_s17 = smov %s1651_s18 }
 0x7d6   : > { %s2124_s18 = smov %s1655_s19  ;;  %s2125_s19 = smov %s1770_s26 }
 0x7d7   : > { %s2126_s20 = smov %s1759_s23  ;;  %23 = sbr.rel (!%p21_p9) target bundleno = 5 (0x5), region = 108 }
 0x7dc   :  { %1358 = vsyncpa [#allocation3], 1 }
 0x7dd   :  { %1360 = vsyncpa [#allocation3 + $0x1], 1 }

</bundles_post_ra>
